<compile_context>
chip_gen: v7x
topology: tpu7x:2x2x1
jax: 0.10.0
libtpu: 0.0.40
codegen_flags: <defaults>
</compile_context>

<pallas_src>
import functools

import jax
import jax.numpy as jnp
from jax import lax
from jax.experimental import pallas as pl
from jax.experimental.pallas import tpu as pltpu

LANES = 128  # every feature dim is zero-padded to a full lane width


# ----------------------------------------------------------------------------
# Fused kernel
# ----------------------------------------------------------------------------
def _fused_gat_kernel(adj_ref, x_ref, w1_ref, w2_ref, fcw_ref, fcb_ref,
                      out_ref, hpre_ref, h1_ref, *, n_total, out_dim, tile_n):
    """grid = (2, num_row_blocks):
         pass p==0: layer-1 aggregation for row block i  -> h1 scratch
         pass p==1: layer-2 aggregation + fc + log_softmax -> out block i
    """
    p = pl.program_id(0)
    i = pl.program_id(1)

    # ---- once per pass: dense pre-aggregation features hpre = H_in @ W (MXU) --
    @pl.when((p == 0) & (i == 0))
    def _():
        hpre_ref[...] = jnp.dot(x_ref[...].astype(jnp.bfloat16),
                                w1_ref[...].astype(jnp.bfloat16),
                                preferred_element_type=jnp.float32)

    @pl.when((p == 1) & (i == 0))
    def _():
        hpre_ref[...] = jnp.dot(h1_ref[...].astype(jnp.bfloat16),
                                w2_ref[...].astype(jnp.bfloat16),
                                preferred_element_type=jnp.float32)

    # ---- neighbor aggregation for this row block ---------------------------
    # Eval-mode identity: the logit is row-constant, so the masked softmax is
    # exactly mask/degree (uniform 1/N for isolated rows).  att_weights and
    # alpha therefore do not affect the eval forward pass.
    mask_f = adj_ref[...].astype(jnp.float32)                 # (T, N) in {0,1}
    deg = jnp.sum(mask_f, axis=1, keepdims=True)              # (T, 1)
    has_nbr = deg > 0.0
    mask_eff = jnp.where(has_nbr, mask_f, 1.0).astype(jnp.bfloat16)
    deg_eff = jnp.where(has_nbr, deg, jnp.float32(n_total))
    agg = jnp.dot(mask_eff, hpre_ref[...].astype(jnp.bfloat16),
                  preferred_element_type=jnp.float32)          # (T, LANES)
    agg = agg * pl.reciprocal(deg_eff, approx=True)

    @pl.when(p == 0)
    def _():
        start = pl.multiple_of(i * tile_n, 8)
        h1_ref[pl.ds(start, tile_n), :] = agg
        # Output block (i, 0) is also mapped during pass 0; write a defined
        # value so its HBM writeback is deterministic (pass 1 overwrites it).
        out_ref[...] = jnp.zeros_like(out_ref)

    @pl.when(p == 1)
    def _():
        logits = jnp.dot(agg.astype(jnp.bfloat16),
                         fcw_ref[...].astype(jnp.bfloat16),
                         preferred_element_type=jnp.float32) + fcb_ref[...]
        lane = lax.broadcasted_iota(jnp.int32, logits.shape, 1)
        valid = lane < out_dim
        masked = jnp.where(valid, logits, jnp.float32(-1e30))
        m = jnp.max(masked, axis=1, keepdims=True)
        lse = m + jnp.log(jnp.sum(jnp.exp(masked - m), axis=1, keepdims=True))
        out_ref[...] = jnp.where(valid, logits - lse, 0.0)


# ----------------------------------------------------------------------------
# Wrapper
# ----------------------------------------------------------------------------
def _pad_to(a, rows, cols):
    out = jnp.zeros((rows, cols), a.dtype)
    return out.at[: a.shape[0], : a.shape[1]].set(a)


def _pick_row_tile(n):
    if n <= 512:
        return n
    for t in (512, 256, 128, 64, 32, 16):
        if n % t == 0:
            return t
    return n


@functools.partial(jax.jit, static_argnames=("alpha",))
def gat_forward(x, adj, params, *, alpha):
    del alpha  # eval-mode attention reduces to degree-normalized adjacency
    n = x.shape[0]
    out_dim = params["w2"].shape[1]

    tile_n = _pick_row_tile(n)
    nb = n // tile_n

    # lane-dense (128-wide) operands; adjacency as bf16 0/1 mask
    xp = _pad_to(x.astype(jnp.float32), n, LANES)
    w1p = _pad_to(params["w1"], LANES, LANES)
    w2p = _pad_to(params["w2"], LANES, LANES)
    fcwp = _pad_to(params["fc_w"], LANES, LANES)
    fcbp = _pad_to(params["fc_b"], 1, LANES)
    mask = (adj > 0).astype(jnp.bfloat16)

    kernel = functools.partial(_fused_gat_kernel, n_total=n, out_dim=out_dim,
                               tile_n=tile_n)
    out_padded = pl.pallas_call(
        kernel,
        out_shape=jax.ShapeDtypeStruct((n, LANES), jnp.float32),
        grid=(2, nb),
        in_specs=[
            pl.BlockSpec((tile_n, n), lambda p, i: (i, 0)),     # adjacency mask
            pl.BlockSpec((n, LANES), lambda p, i: (0, 0)),      # x (resident)
            pl.BlockSpec((LANES, LANES), lambda p, i: (0, 0)),  # w1
            pl.BlockSpec((LANES, LANES), lambda p, i: (0, 0)),  # w2
            pl.BlockSpec((LANES, LANES), lambda p, i: (0, 0)),  # fc_w
            pl.BlockSpec((1, LANES), lambda p, i: (0, 0)),      # fc_b
        ],
        out_specs=pl.BlockSpec((tile_n, LANES), lambda p, i: (i, 0)),
        scratch_shapes=[
            pltpu.VMEM((n, LANES), jnp.float32),   # hpre: current layer X @ W
            pltpu.VMEM((n, LANES), jnp.float32),   # h1:   layer-1 output
        ],
        compiler_params=pltpu.CompilerParams(
            # Cross-iteration deps (h1 produced in pass 0, consumed in pass 1)
            # => both axes sequential.
            dimension_semantics=("arbitrary", "arbitrary"),
            vmem_limit_bytes=32 * 1024 * 1024,
        ),
    )(mask, xp, w1p, w2p, fcwp, fcbp)
    return out_padded[:, :out_dim]


# ----------------------------------------------------------------------------
# Pure-JAX reference (original full-softmax formulation, for sanity check)
# ----------------------------------------------------------------------------
def gat_forward_ref(x, adj, params, *, alpha):
    def layer(xx, w, attw):
        h = xx @ w
        a = jnp.sum(h * attw, axis=-1, keepdims=True)
        logits = jnp.where(adj > 0, a, jnp.float32(-9e15))
        logits = jnp.where(logits > 0, logits, alpha * logits)   # leaky_relu
        attn = jax.nn.softmax(logits, axis=1)
        return attn @ h

    h = layer(x, params["w1"], params["att1"])
    h = layer(h, params["w2"], params["att2"])
    o = h @ params["fc_w"] + params["fc_b"]
    return jax.nn.log_softmax(o, axis=1)


# ----------------------------------------------------------------------------
# Deterministic parameter init
# ----------------------------------------------------------------------------
def init_params(key, in_dim, hidden_dim, out_dim):
    ks = jax.random.split(key, 6)

    def linear_w(k, fan_in, fan_out):
        bound = 1.0 / jnp.sqrt(fan_in)
        # stored pre-transposed: (fan_in, fan_out)
        return jax.random.uniform(k, (fan_in, fan_out), jnp.float32, -bound, bound)

    def xavier_att(k, dim, gain=1.414):
        bound = gain * jnp.sqrt(6.0 / (dim + 1))
        return jax.random.uniform(k, (1, dim), jnp.float32, -bound, bound)

    b_bound = 1.0 / jnp.sqrt(out_dim)
    return {
        "w1": linear_w(ks[0], in_dim, hidden_dim),
        "att1": xavier_att(ks[1], hidden_dim),   # kept for interface fidelity
        "w2": linear_w(ks[2], hidden_dim, out_dim),
        "att2": xavier_att(ks[3], out_dim),      # kept for interface fidelity
        "fc_w": linear_w(ks[4], out_dim, out_dim),
        "fc_b": jax.random.uniform(ks[5], (1, out_dim), jnp.float32,
                                   -b_bound, b_bound),
    }


# ----------------------------------------------------------------------------
# Main
# ----------------------------------------------------------------------------
if __name__ == "__main__":
    N, IN_DIM, HIDDEN_DIM, OUT_DIM = 64, 16, 32, 16
    ALPHA = 0.2  # leaky_relu negative slope (no effect on eval forward)

    key = jax.random.PRNGKey(0)
    kx, ka, kp = jax.random.split(key, 3)

    X = jax.random.normal(kx, (N, IN_DIM), jnp.float32)
    # random sparse adjacency with self loops
    A = (jax.random.uniform(ka, (N, N)) < 0.2).astype(jnp.float32)
    A = jnp.maximum(A, jnp.eye(N, dtype=jnp.float32))

    params = init_params(kp, IN_DIM, HIDDEN_DIM, OUT_DIM)

    out = gat_forward(X, A, params, alpha=ALPHA)
    out = jax.block_until_ready(out)

    ref = gat_forward_ref(X, A, params, alpha=ALPHA)
    assert out.shape == (N, OUT_DIM)
    err = float(jnp.max(jnp.abs(out - ref)))
    # bf16 MXU operands (f32 accumulation) + approx reciprocal: ~4e-3 abs error.
    assert err < 2e-2, f"mismatch vs JAX reference: {err}"

    print("KERNEL_OK")
</pallas_src>

<mosaic_0001>
module attributes {stable_mosaic.version = 11 : i64} {
  func.func @_fused_gat_kernel(%arg0: i32, %arg1: i32, %arg2: memref<64x64xbf16, #tpu.memory_space<vmem>>, %arg3: memref<64x128xf32, #tpu.memory_space<vmem>>, %arg4: memref<128x128xf32, #tpu.memory_space<vmem>>, %arg5: memref<128x128xf32, #tpu.memory_space<vmem>>, %arg6: memref<128x128xf32, #tpu.memory_space<vmem>>, %arg7: memref<1x128xf32, #tpu.memory_space<vmem>>, %arg8: memref<64x128xf32, #tpu.memory_space<vmem>>, %arg9: memref<64x128xf32, #tpu.memory_space<vmem>>, %arg10: memref<64x128xf32, #tpu.memory_space<vmem>>) attributes {dimension_semantics = [#tpu.dimension_semantics<arbitrary>, #tpu.dimension_semantics<arbitrary>], iteration_bounds = array<i64: 2, 1>, scalar_prefetch = 0 : i64, scratch_operands = 2 : i64, tpu.core_type = #tpu.core_type<tc>, window_params = [{transform_indices = @transform_0, window_bounds = array<i64: 64, 64>}, {pipeline_mode = #tpu.pipeline_mode<synchronous>, transform_indices = @transform_1, window_bounds = array<i64: 64, 128>}, {pipeline_mode = #tpu.pipeline_mode<synchronous>, transform_indices = @transform_2, window_bounds = array<i64: 128, 128>}, {pipeline_mode = #tpu.pipeline_mode<synchronous>, transform_indices = @transform_3, window_bounds = array<i64: 128, 128>}, {pipeline_mode = #tpu.pipeline_mode<synchronous>, transform_indices = @transform_4, window_bounds = array<i64: 128, 128>}, {pipeline_mode = #tpu.pipeline_mode<synchronous>, transform_indices = @transform_5, window_bounds = array<i64: 1, 128>}, {transform_indices = @transform_6, window_bounds = array<i64: 64, 128>}]} {
    %c0_i32 = arith.constant 0 : i32
    %0 = arith.cmpi eq, %arg0, %c0_i32 : i32
    %c0_i32_0 = arith.constant 0 : i32
    %1 = arith.cmpi eq, %arg1, %c0_i32_0 : i32
    %2 = arith.andi %0, %1 : i1
    %3 = arith.extui %2 : i1 to i32
    %c0_i32_1 = arith.constant 0 : i32
    %4 = arith.cmpi ne, %3, %c0_i32_1 : i32
    scf.if %4 {
      %c0_15 = arith.constant 0 : index
      %c0_16 = arith.constant 0 : index
      %35 = vector.load %arg3[%c0_15, %c0_16] : memref<64x128xf32, #tpu.memory_space<vmem>>, vector<64x128xf32>
      %36 = arith.truncf %35 : vector<64x128xf32> to vector<64x128xbf16>
      %c0_17 = arith.constant 0 : index
      %c0_18 = arith.constant 0 : index
      %37 = vector.load %arg4[%c0_17, %c0_18] : memref<128x128xf32, #tpu.memory_space<vmem>>, vector<128x128xf32>
      %38 = arith.truncf %37 : vector<128x128xf32> to vector<128x128xbf16>
      %cst_19 = arith.constant dense<0.000000e+00> : vector<64x128xf32>
      %39 = tpu.matmul %36, %38, %cst_19 {dimension_numbers = #tpu.dot_dimension_numbers<[1], [0], [0], [1], [0, 0, 1, 1], [], []>} : vector<64x128xbf16>, vector<128x128xbf16>, vector<64x128xf32> -> vector<64x128xf32>
      %c0_20 = arith.constant 0 : index
      %c0_21 = arith.constant 0 : index
      %40 = vector.load %arg9[%c0_20, %c0_21] : memref<64x128xf32, #tpu.memory_space<vmem>>, vector<64x128xf32>
      tpu.vector_store %arg9[%c0_20, %c0_21], %39 {strides = array<i32>} : memref<64x128xf32, #tpu.memory_space<vmem>>, vector<64x128xf32>,
    } else {
    }
    %c1_i32 = arith.constant 1 : i32
    %5 = arith.cmpi eq, %arg0, %c1_i32 : i32
    %c0_i32_2 = arith.constant 0 : i32
    %6 = arith.cmpi eq, %arg1, %c0_i32_2 : i32
    %7 = arith.andi %5, %6 : i1
    %8 = arith.extui %7 : i1 to i32
    %c0_i32_3 = arith.constant 0 : i32
    %9 = arith.cmpi ne, %8, %c0_i32_3 : i32
    scf.if %9 {
      %c0_15 = arith.constant 0 : index
      %c0_16 = arith.constant 0 : index
      %35 = vector.load %arg10[%c0_15, %c0_16] : memref<64x128xf32, #tpu.memory_space<vmem>>, vector<64x128xf32>
      %36 = arith.truncf %35 : vector<64x128xf32> to vector<64x128xbf16>
      %c0_17 = arith.constant 0 : index
      %c0_18 = arith.constant 0 : index
      %37 = vector.load %arg5[%c0_17, %c0_18] : memref<128x128xf32, #tpu.memory_space<vmem>>, vector<128x128xf32>
      %38 = arith.truncf %37 : vector<128x128xf32> to vector<128x128xbf16>
      %cst_19 = arith.constant dense<0.000000e+00> : vector<64x128xf32>
      %39 = tpu.matmul %36, %38, %cst_19 {dimension_numbers = #tpu.dot_dimension_numbers<[1], [0], [0], [1], [0, 0, 1, 1], [], []>} : vector<64x128xbf16>, vector<128x128xbf16>, vector<64x128xf32> -> vector<64x128xf32>
      %c0_20 = arith.constant 0 : index
      %c0_21 = arith.constant 0 : index
      %40 = vector.load %arg9[%c0_20, %c0_21] : memref<64x128xf32, #tpu.memory_space<vmem>>, vector<64x128xf32>
      tpu.vector_store %arg9[%c0_20, %c0_21], %39 {strides = array<i32>} : memref<64x128xf32, #tpu.memory_space<vmem>>, vector<64x128xf32>,
    } else {
    }
    %c0 = arith.constant 0 : index
    %c0_4 = arith.constant 0 : index
    %10 = vector.load %arg2[%c0, %c0_4] : memref<64x64xbf16, #tpu.memory_space<vmem>>, vector<64x64xbf16>
    %11 = arith.extf %10 : vector<64x64xbf16> to vector<64x64xf32>
    %cst = arith.constant dense<0.000000e+00> : vector<64xf32>
    %12 = vector.multi_reduction <add>, %11, %cst [1] : vector<64x64xf32> to vector<64xf32>
    %13 = vector.shape_cast %12 : vector<64xf32> to vector<64x1xf32>
    %cst_5 = arith.constant 0.000000e+00 : f32
    %14 = vector.broadcast %cst_5 : f32 to vector<64x1xf32>
    %15 = arith.cmpf ogt, %13, %14 : vector<64x1xf32>
    %cst_6 = arith.constant 1.000000e+00 : f32
    %16 = vector.shape_cast %15 : vector<64x1xi1> to vector<64x1xi1>
    %17 = vector.broadcast %16 : vector<64x1xi1> to vector<64x64xi1>
    %18 = vector.broadcast %cst_6 : f32 to vector<64x64xf32>
    %19 = arith.select %17, %11, %18 : vector<64x64xi1>, vector<64x64xf32>
    %20 = arith.truncf %19 : vector<64x64xf32> to vector<64x64xbf16>
    %cst_7 = arith.constant 6.400000e+01 : f32
    %21 = vector.broadcast %cst_7 : f32 to vector<64x1xf32>
    %22 = arith.select %15, %13, %21 : vector<64x1xi1>, vector<64x1xf32>
    %c0_8 = arith.constant 0 : index
    %c0_9 = arith.constant 0 : index
    %23 = vector.load %arg9[%c0_8, %c0_9] : memref<64x128xf32, #tpu.memory_space<vmem>>, vector<64x128xf32>
    %24 = arith.truncf %23 : vector<64x128xf32> to vector<64x128xbf16>
    %cst_10 = arith.constant dense<0.000000e+00> : vector<64x128xf32>
    %25 = tpu.matmul %20, %24, %cst_10 {dimension_numbers = #tpu.dot_dimension_numbers<[1], [0], [0], [1], [0, 0, 1, 1], [], []>} : vector<64x64xbf16>, vector<64x128xbf16>, vector<64x128xf32> -> vector<64x128xf32>
    %26 = tpu.reciprocal %22 {approx = true} : vector<64x1xf32> -> vector<64x1xf32>
    %27 = vector.broadcast %26 : vector<64x1xf32> to vector<64x128xf32>
    %28 = arith.mulf %25, %27 : vector<64x128xf32>
    %c0_i32_11 = arith.constant 0 : i32
    %29 = arith.cmpi eq, %arg0, %c0_i32_11 : i32
    %30 = arith.extui %29 : i1 to i32
    %c0_i32_12 = arith.constant 0 : i32
    %31 = arith.cmpi ne, %30, %c0_i32_12 : i32
    scf.if %31 {
      %c64_i32 = arith.constant 64 : i32
      %35 = arith.muli %arg1, %c64_i32 : i32
      %36 = tpu.assume_multiple %35, 8 : i32
      %37 = arith.index_cast %36 : i32 to index
      %c0_15 = arith.constant 0 : index
      %38 = vector.load %arg10[%37, %c0_15] : memref<64x128xf32, #tpu.memory_space<vmem>>, vector<64x128xf32>
      tpu.vector_store %arg10[%37, %c0_15], %28 {strides = array<i32>} : memref<64x128xf32, #tpu.memory_space<vmem>>, vector<64x128xf32>,
      %cst_16 = arith.constant 0.000000e+00 : f32
      %39 = vector.broadcast %cst_16 : f32 to vector<64x128xf32>
      %c0_17 = arith.constant 0 : index
      %c0_18 = arith.constant 0 : index
      %40 = vector.load %arg8[%c0_17, %c0_18] : memref<64x128xf32, #tpu.memory_space<vmem>>, vector<64x128xf32>
      tpu.vector_store %arg8[%c0_17, %c0_18], %39 {strides = array<i32>} : memref<64x128xf32, #tpu.memory_space<vmem>>, vector<64x128xf32>,
    } else {
    }
    %c1_i32_13 = arith.constant 1 : i32
    %32 = arith.cmpi eq, %arg0, %c1_i32_13 : i32
    %33 = arith.extui %32 : i1 to i32
    %c0_i32_14 = arith.constant 0 : i32
    %34 = arith.cmpi ne, %33, %c0_i32_14 : i32
    scf.if %34 {
      %35 = arith.truncf %28 : vector<64x128xf32> to vector<64x128xbf16>
      %c0_15 = arith.constant 0 : index
      %c0_16 = arith.constant 0 : index
      %36 = vector.load %arg6[%c0_15, %c0_16] : memref<128x128xf32, #tpu.memory_space<vmem>>, vector<128x128xf32>
      %37 = arith.truncf %36 : vector<128x128xf32> to vector<128x128xbf16>
      %cst_17 = arith.constant dense<0.000000e+00> : vector<64x128xf32>
      %38 = tpu.matmul %35, %37, %cst_17 {dimension_numbers = #tpu.dot_dimension_numbers<[1], [0], [0], [1], [0, 0, 1, 1], [], []>} : vector<64x128xbf16>, vector<128x128xbf16>, vector<64x128xf32> -> vector<64x128xf32>
      %c0_18 = arith.constant 0 : index
      %c0_19 = arith.constant 0 : index
      %39 = vector.load %arg7[%c0_18, %c0_19] : memref<1x128xf32, #tpu.memory_space<vmem>>, vector<1x128xf32>
      %40 = vector.broadcast %39 : vector<1x128xf32> to vector<64x128xf32>
      %41 = arith.addf %38, %40 : vector<64x128xf32>
      %42 = tpu.iota {dimensions = array<i32: 1>} : vector<64x128xi32>
      %c16_i32 = arith.constant 16 : i32
      %43 = vector.broadcast %c16_i32 : i32 to vector<64x128xi32>
      %44 = arith.cmpi slt, %42, %43 : vector<64x128xi32>
      %cst_20 = arith.constant -1.000000e+30 : f32
      %45 = vector.broadcast %cst_20 : f32 to vector<64x128xf32>
      %46 = arith.select %44, %41, %45 : vector<64x128xi1>, vector<64x128xf32>
      %cst_21 = arith.constant dense<0xFF800000> : vector<64xf32>
      %47 = vector.multi_reduction <maximumf>, %46, %cst_21 [1] : vector<64x128xf32> to vector<64xf32>
      %48 = vector.shape_cast %47 : vector<64xf32> to vector<64x1xf32>
      %49 = vector.broadcast %48 : vector<64x1xf32> to vector<64x128xf32>
      %50 = arith.subf %46, %49 : vector<64x128xf32>
      %51 = math.exp %50 : vector<64x128xf32>
      %cst_22 = arith.constant dense<0.000000e+00> : vector<64xf32>
      %52 = vector.multi_reduction <add>, %51, %cst_22 [1] : vector<64x128xf32> to vector<64xf32>
      %53 = vector.shape_cast %52 : vector<64xf32> to vector<64x1xf32>
      %54 = math.log %53 : vector<64x1xf32>
      %55 = arith.addf %48, %54 : vector<64x1xf32>
      %56 = vector.broadcast %55 : vector<64x1xf32> to vector<64x128xf32>
      %57 = arith.subf %41, %56 : vector<64x128xf32>
      %cst_23 = arith.constant 0.000000e+00 : f32
      %58 = vector.broadcast %cst_23 : f32 to vector<64x128xf32>
      %59 = arith.select %44, %57, %58 : vector<64x128xi1>, vector<64x128xf32>
      %c0_24 = arith.constant 0 : index
      %c0_25 = arith.constant 0 : index
      %60 = vector.load %arg8[%c0_24, %c0_25] : memref<64x128xf32, #tpu.memory_space<vmem>>, vector<64x128xf32>
      tpu.vector_store %arg8[%c0_24, %c0_25], %59 {strides = array<i32>} : memref<64x128xf32, #tpu.memory_space<vmem>>, vector<64x128xf32>,
    } else {
    }
    return
  }
  func.func @transform_0(%arg0: i32, %arg1: i32) -> (i32, i32) {
    %c0_i32 = arith.constant 0 : i32
    %c0_i32_0 = arith.constant 0 : i32
    return %arg1, %c0_i32 : i32, i32
  }
  func.func @transform_1(%arg0: i32, %arg1: i32) -> (i32, i32) {
    %c0_i32 = arith.constant 0 : i32
    %c0_i32_0 = arith.constant 0 : i32
    %c0_i32_1 = arith.constant 0 : i32
    return %c0_i32, %c0_i32_0 : i32, i32
  }
  func.func @transform_2(%arg0: i32, %arg1: i32) -> (i32, i32) {
    %c0_i32 = arith.constant 0 : i32
    %c0_i32_0 = arith.constant 0 : i32
    %c0_i32_1 = arith.constant 0 : i32
    return %c0_i32, %c0_i32_0 : i32, i32
  }
  func.func @transform_3(%arg0: i32, %arg1: i32) -> (i32, i32) {
    %c0_i32 = arith.constant 0 : i32
    %c0_i32_0 = arith.constant 0 : i32
    %c0_i32_1 = arith.constant 0 : i32
    return %c0_i32, %c0_i32_0 : i32, i32
  }
  func.func @transform_4(%arg0: i32, %arg1: i32) -> (i32, i32) {
    %c0_i32 = arith.constant 0 : i32
    %c0_i32_0 = arith.constant 0 : i32
    %c0_i32_1 = arith.constant 0 : i32
    return %c0_i32, %c0_i32_0 : i32, i32
  }
  func.func @transform_5(%arg0: i32, %arg1: i32) -> (i32, i32) {
    %c0_i32 = arith.constant 0 : i32
    %c0_i32_0 = arith.constant 0 : i32
    %c0_i32_1 = arith.constant 0 : i32
    return %c0_i32, %c0_i32_0 : i32, i32
  }
  func.func @transform_6(%arg0: i32, %arg1: i32) -> (i32, i32) {
    %c0_i32 = arith.constant 0 : i32
    %c0_i32_0 = arith.constant 0 : i32
    return %arg1, %c0_i32 : i32, i32
  }
}

</mosaic_0001>

<bundles_post_ra>
// kernel: gat_forward.1
= control target key start
LH: loop header
LB: loop body
LE: loop exit
PB: predicated region body
PF: predicated region fallthrough
CT: control target
= control target key end

     0   :  { %s1352_s21 = smov 0   ;;  %s1354_s22 = smov 0   ;;  %s1787_s0 = inlined_call_operand.vmem [shape: bf16[64,64], index: 0, kind: input, shape index: {}]   ;;  %s1788_s1 = inlined_call_operand.vmem [shape: f32[64,128], index: 1, kind: input, shape index: {}]   ;;  %s1789_s2 = inlined_call_operand.vmem [shape: f32[128,128], index: 2, kind: input, shape index: {}]   ;;  %s1790_s3 = inlined_call_operand.vmem [shape: f32[128,128], index: 3, kind: input, shape index: {}]   ;;  %s1791_s4 = inlined_call_operand.vmem [shape: f32[128,128], index: 4, kind: input, shape index: {}]   ;;  %s1792_s5 = inlined_call_operand.vmem [shape: f32[1,128], index: 5, kind: input, shape index: {}]   ;;  %s1793_s6 = inlined_call_operand.vmem [shape: f32[64,128], index: 6, kind: output, shape index: {}]  }
   0x1   :  { %s1356_s23 = smov 0  }
   0x2 LB: > { %s28_s24 = sadd.s32 1, %s1310_s22  ;;  %p996_p0 = scmp.ge.s32.totalorder %s1314_s23, 1  ;;  %s1314_s23 = sphi %s1356_s23, %s16_s23   ;;  %s1310_s22 = sphi %s1354_s22, %s1795_s22   ;;  %s1306_s21 = sphi %s1352_s21, %s1794_s21  }
   0x3   : > { %p30_p1 = scmp.ge.s32.totalorder %s28_s24, 2  ;;  %p225_p2 = scmp.lt.s32.totalorder %s1314_s23, 3 }
   0x5   : > { %s1797_s24 = smov (%p30_p1, %s28_s24), 0  ;;  %p226_p3 = pnand %p996_p0, %p225_p2 }
   0x6   : > { %p268_p4 = scmp.eq.s32.totalorder (!%p226_p3), %s1306_s21, 0 }
   0x7   : > { %229 = sbr.rel (%p226_p3) target bundleno = 1483 (0x5cb), region = 44 }
   0xe   : > { %273 = sbr.rel (!%p268_p4) target bundleno = 265 (0x109), region = 48  ;;  %v286_v0 = vld [vmem:[%s1789_s2] sm:$0xff] (%p268_p4)  ;;  %v287_v1 = vld [vmem:[%s1789_s2 + $0x8] sm:$0xff] (%p268_p4)  ;;  %v288_v2 = vld [vmem:[%s1789_s2 + $0x10] sm:$0xff] (%p268_p4) }
   0xf   : > { %v302_v3 = vpack.c.bf16 (%p268_p4), %v287_v1, %v286_v0  ;;  %v289_v4 = vld [vmem:[%s1789_s2 + $0x18] sm:$0xff] (%p268_p4)  ;;  %v290_v6 = vld [vmem:[%s1789_s2 + $0x20] sm:$0xff] (%p268_p4)  ;;  %v291_v7 = vld [vmem:[%s1789_s2 + $0x28] sm:$0xff] (%p268_p4) }
  0x10   : > { %v303_v5 = vpack.c.bf16 (%p268_p4), %v289_v4, %v288_v2  ;;  %v304_v8 = vpack.c.bf16 (%p268_p4), %v291_v7, %v290_v6  ;;  %v292_v9 = vld [vmem:[%s1789_s2 + $0x30] sm:$0xff] (%p268_p4)  ;;  %v274_v10 = vld [vmem:[%s1788_s1] sm:$0xff] (%p268_p4)  ;;  %v275_v11 = vld [vmem:[%s1788_s1 + $0x8] sm:$0xff] (%p268_p4) }
  0x11   : > { %1075 = vmatprep.subr.bf16.mxu0 (%p268_p4), %v302_v3  ;;  %1163 = vmatprep.subr.bf16.mxu1 (%p268_p4), %v302_v3  ;;  %v293_v12 = vld [vmem:[%s1789_s2 + $0x38] sm:$0xff] (%p268_p4)  ;;  %v282_v13 = vpack.c.bf16 (%p268_p4), %v275_v11, %v274_v10  ;;  %v278_v14 = vld [vmem:[%s1788_s1 + $0x20] sm:$0xff] (%p268_p4)  ;;  %v279_v15 = vld [vmem:[%s1788_s1 + $0x28] sm:$0xff] (%p268_p4) }
  0x12   : > { %1076 = vmatpush3.bf16.msra.mxu0 (%p268_p4), %v302_v3  ;;  %1171 = vmatpush3.bf16.msra.mxu1 (%p268_p4), %v302_v3  ;;  %v284_v16 = vpack.c.bf16 (%p268_p4), %v279_v15, %v278_v14  ;;  %v305_v17 = vpack.c.bf16 (%p268_p4), %v293_v12, %v292_v9  ;;  %v294_v18 = vld [vmem:[%s1789_s2 + $0x40] sm:$0xff] (%p268_p4)  ;;  %v295_v19 = vld [vmem:[%s1789_s2 + $0x48] sm:$0xff] (%p268_p4)  ;;  %v296_v21 = vld [vmem:[%s1789_s2 + $0x50] sm:$0xff] (%p268_p4) }
  0x13   : > { %1077 = vmatprep.subr.bf16.mxu0 (%p268_p4), %v303_v5  ;;  %1164 = vmatprep.subr.bf16.mxu1 (%p268_p4), %v303_v5  ;;  %v306_v20 = vpack.c.bf16 (%p268_p4), %v295_v19, %v294_v18  ;;  %v297_v22 = vld [vmem:[%s1789_s2 + $0x58] sm:$0xff] (%p268_p4)  ;;  %v298_v24 = vld [vmem:[%s1789_s2 + $0x60] sm:$0xff] (%p268_p4)  ;;  %v299_v25 = vld [vmem:[%s1789_s2 + $0x68] sm:$0xff] (%p268_p4) }
  0x14   : > { %1091 = vmatprep.mubr.bf16.mxu0 (%p268_p4), %v282_v13  ;;  %1095 = vmatprep.mubr.bf16.mxu1 (%p268_p4), %v284_v16  ;;  %v307_v23 = vpack.c.bf16 (%p268_p4), %v297_v22, %v296_v21  ;;  %v308_v26 = vpack.c.bf16 (%p268_p4), %v299_v25, %v298_v24  ;;  %v300_v27 = vld [vmem:[%s1789_s2 + $0x70] sm:$0xff] (%p268_p4)  ;;  %v301_v28 = vld [vmem:[%s1789_s2 + $0x78] sm:$0xff] (%p268_p4) }
  0x15   : > { %v309_v29 = vpack.c.bf16 %v301_v28, %v300_v27  ;;  %v276_v30 = vld [vmem:[%s1788_s1 + $0x10] sm:$0xff]  ;;  %v277_v31 = vld [vmem:[%s1788_s1 + $0x18] sm:$0xff] }
  0x16   : > { %1078 = vmatpush3.bf16.msra.mxu0 %v303_v5  ;;  %1172 = vmatpush3.bf16.msra.mxu1 %v303_v5  ;;  %v280_v32 = vld [vmem:[%s1788_s1 + $0x30] sm:$0xff]  ;;  %v281_v33 = vld [vmem:[%s1788_s1 + $0x38] sm:$0xff]  ;;  %v283_v34 = vpack.c.bf16 %v277_v31, %v276_v30 }
  0x17   : > { %1079 = vmatprep.subr.bf16.mxu0 %v304_v8  ;;  %1165 = vmatprep.subr.bf16.mxu1 %v304_v8  ;;  %v285_v35 = vpack.c.bf16 %v281_v33, %v280_v32 }
  0x1a   : > { %1080 = vmatpush3.bf16.msra.mxu0 %v304_v8  ;;  %1173 = vmatpush3.bf16.msra.mxu1 %v304_v8 }
  0x1b   : > { %1081 = vmatprep.subr.bf16.mxu0 %v305_v17  ;;  %1166 = vmatprep.subr.bf16.mxu1 %v305_v17 }
  0x1e   : > { %1082 = vmatpush3.bf16.msra.mxu0 %v305_v17  ;;  %1174 = vmatpush3.bf16.msra.mxu1 %v305_v17 }
  0x1f   : > { %1083 = vmatprep.subr.bf16.mxu0 %v306_v20  ;;  %1167 = vmatprep.subr.bf16.mxu1 %v306_v20 }
  0x22   : > { %1084 = vmatpush3.bf16.msra.mxu0 %v306_v20  ;;  %1175 = vmatpush3.bf16.msra.mxu1 %v306_v20 }
  0x23   : > { %1085 = vmatprep.subr.bf16.mxu0 %v307_v23  ;;  %1168 = vmatprep.subr.bf16.mxu1 %v307_v23 }
  0x26   : > { %1086 = vmatpush3.bf16.msra.mxu0 %v307_v23  ;;  %1176 = vmatpush3.bf16.msra.mxu1 %v307_v23 }
  0x27   : > { %1087 = vmatprep.subr.bf16.mxu0 %v308_v26  ;;  %1169 = vmatprep.subr.bf16.mxu1 %v308_v26 }
  0x2a   : > { %1088 = vmatpush3.bf16.msra.mxu0 %v308_v26  ;;  %1177 = vmatpush3.bf16.msra.mxu1 %v308_v26 }
  0x2b   : > { %1089 = vmatprep.subr.bf16.mxu0 %v309_v29  ;;  %1170 = vmatprep.subr.bf16.mxu1 %v309_v29 }
  0x2e   : > { %1090 = vmatpush3.bf16.msra.mxu0 %v309_v29  ;;  %1178 = vmatpush3.bf16.msra.mxu1 %v309_v29 }
  0x31   : > { %1092 = vmatmul.mubr.bf16.vlgmr.msra.gmra.mrb[0].mxu0 %v283_v34  ;;  %1096 = vmatmul.mubr.bf16.vlgmr.msra.gmra.mrb[0].mxu1 %v285_v35 }
 0x104   : > { %v1093_v36 = vpop.f32.mrb[0].mxu0  ;;  %v1097_v37 = vpop.f32.mrb[0].mxu1 }
 0x105   : > { %377 = vst [vmem:[#allocation2 + $0x10] sm:$0xff] %v1093_v36  ;;  %381 = vst [vmem:[#allocation2 + $0x30] sm:$0xff] %v1097_v37  ;;  %v344_v38 = vpop.f32.mrb[1].mxu0  ;;  %v360_v39 = vpop.f32.mrb[1].mxu1 }
 0x106   : > { %375 = vst [vmem:[#allocation2] sm:$0xff] %v344_v38  ;;  %379 = vst [vmem:[#allocation2 + $0x20] sm:$0xff] %v360_v39  ;;  %v1094_v40 = vpop.f32.mrb[2].mxu0  ;;  %v1098_v41 = vpop.f32.mrb[2].mxu1 }
 0x107   : > { %378 = vst [vmem:[#allocation2 + $0x18] sm:$0xff] %v1094_v40  ;;  %382 = vst [vmem:[#allocation2 + $0x38] sm:$0xff] %v1098_v41  ;;  %v347_v42 = vpop.f32.mrb[3].mxu0  ;;  %v363_v43 = vpop.f32.mrb[3].mxu1 }
 0x108   : > { %376 = vst [vmem:[#allocation2 + $0x8] sm:$0xff] %v347_v42  ;;  %380 = vst [vmem:[#allocation2 + $0x28] sm:$0xff] %v363_v43 }
 0x109 PF: > { %p383_p5 = scmp.eq.s32.totalorder %s1306_s21, 1 }
 0x10a   : > { %v400_v44 = vld [vmem:[%s1790_s3] sm:$0xff] (%p383_p5)  ;;  %v401_v45 = vld [vmem:[%s1790_s3 + $0x8] sm:$0xff] (%p383_p5)  ;;  %v402_v46 = vld [vmem:[%s1790_s3 + $0x10] sm:$0xff] (%p383_p5) }
 0x10b   : > { %387 = sbr.rel (!%p383_p5) target bundleno = 517 (0x205), region = 52  ;;  %v416_v47 = vpack.c.bf16 (%p383_p5), %v401_v45, %v400_v44  ;;  %v403_v48 = vld [vmem:[%s1790_s3 + $0x18] sm:$0xff] (%p383_p5)  ;;  %v404_v50 = vld [vmem:[%s1790_s3 + $0x20] sm:$0xff] (%p383_p5)  ;;  %v405_v51 = vld [vmem:[%s1790_s3 + $0x28] sm:$0xff] (%p383_p5) }
 0x10c   : > { %v417_v49 = vpack.c.bf16 (%p383_p5), %v403_v48, %v402_v46  ;;  %v418_v52 = vpack.c.bf16 (%p383_p5), %v405_v51, %v404_v50  ;;  %v406_v53 = vld [vmem:[%s1790_s3 + $0x30] sm:$0xff] (%p383_p5)  ;;  %v388_v54 = vld [vmem:[#allocation3] sm:$0xff] (%p383_p5)  ;;  %v389_v55 = vld [vmem:[#allocation3 + $0x8] sm:$0xff] (%p383_p5) }
 0x10d   : > { %1099 = vmatprep.subr.bf16.mxu0 (%p383_p5), %v416_v47  ;;  %1179 = vmatprep.subr.bf16.mxu1 (%p383_p5), %v416_v47  ;;  %v407_v56 = vld [vmem:[%s1790_s3 + $0x38] sm:$0xff] (%p383_p5)  ;;  %v396_v57 = vpack.c.bf16 (%p383_p5), %v389_v55, %v388_v54  ;;  %v392_v58 = vld [vmem:[#allocation3 + $0x20] sm:$0xff] (%p383_p5)  ;;  %v393_v59 = vld [vmem:[#allocation3 + $0x28] sm:$0xff] (%p383_p5) }
 0x10e   : > { %1100 = vmatpush3.bf16.msra.mxu0 (%p383_p5), %v416_v47  ;;  %1187 = vmatpush3.bf16.msra.mxu1 (%p383_p5), %v416_v47  ;;  %v398_v60 = vpack.c.bf16 (%p383_p5), %v393_v59, %v392_v58  ;;  %v419_v61 = vpack.c.bf16 (%p383_p5), %v407_v56, %v406_v53  ;;  %v408_v62 = vld [vmem:[%s1790_s3 + $0x40] sm:$0xff] (%p383_p5)  ;;  %v409_v63 = vld [vmem:[%s1790_s3 + $0x48] sm:$0xff] (%p383_p5)  ;;  %v410_v1 = vld [vmem:[%s1790_s3 + $0x50] sm:$0xff] (%p383_p5) }
 0x10f   : > { %1101 = vmatprep.subr.bf16.mxu0 (%p383_p5), %v417_v49  ;;  %1180 = vmatprep.subr.bf16.mxu1 (%p383_p5), %v417_v49  ;;  %v420_v0 = vpack.c.bf16 (%p383_p5), %v409_v63, %v408_v62  ;;  %v411_v2 = vld [vmem:[%s1790_s3 + $0x58] sm:$0xff] (%p383_p5)  ;;  %v412_v4 = vld [vmem:[%s1790_s3 + $0x60] sm:$0xff] (%p383_p5)  ;;  %v413_v5 = vld [vmem:[%s1790_s3 + $0x68] sm:$0xff] (%p383_p5) }
 0x110   : > { %1115 = vmatprep.mubr.bf16.mxu0 (%p383_p5), %v396_v57  ;;  %1119 = vmatprep.mubr.bf16.mxu1 (%p383_p5), %v398_v60  ;;  %v421_v3 = vpack.c.bf16 (%p383_p5), %v411_v2, %v410_v1  ;;  %v422_v6 = vpack.c.bf16 (%p383_p5), %v413_v5, %v412_v4  ;;  %v414_v7 = vld [vmem:[%s1790_s3 + $0x70] sm:$0xff] (%p383_p5)  ;;  %v415_v8 = vld [vmem:[%s1790_s3 + $0x78] sm:$0xff] (%p383_p5) }
 0x111   : > { %v423_v9 = vpack.c.bf16 (%p383_p5), %v415_v8, %v414_v7  ;;  %v390_v10 = vld [vmem:[#allocation3 + $0x10] sm:$0xff] (%p383_p5)  ;;  %v391_v11 = vld [vmem:[#allocation3 + $0x18] sm:$0xff] (%p383_p5) }
 0x112   : > { %1102 = vmatpush3.bf16.msra.mxu0 %v417_v49  ;;  %1188 = vmatpush3.bf16.msra.mxu1 %v417_v49  ;;  %v394_v12 = vld [vmem:[#allocation3 + $0x30] sm:$0xff]  ;;  %v395_v13 = vld [vmem:[#allocation3 + $0x38] sm:$0xff]  ;;  %v397_v14 = vpack.c.bf16 %v391_v11, %v390_v10 }
 0x113   : > { %1103 = vmatprep.subr.bf16.mxu0 %v418_v52  ;;  %1181 = vmatprep.subr.bf16.mxu1 %v418_v52  ;;  %v399_v15 = vpack.c.bf16 %v395_v13, %v394_v12 }
 0x116   : > { %1104 = vmatpush3.bf16.msra.mxu0 %v418_v52  ;;  %1189 = vmatpush3.bf16.msra.mxu1 %v418_v52 }
 0x117   : > { %1105 = vmatprep.subr.bf16.mxu0 %v419_v61  ;;  %1182 = vmatprep.subr.bf16.mxu1 %v419_v61 }
 0x11a   : > { %1106 = vmatpush3.bf16.msra.mxu0 %v419_v61  ;;  %1190 = vmatpush3.bf16.msra.mxu1 %v419_v61 }
 0x11b   : > { %1107 = vmatprep.subr.bf16.mxu0 %v420_v0  ;;  %1183 = vmatprep.subr.bf16.mxu1 %v420_v0 }
 0x11e   : > { %1108 = vmatpush3.bf16.msra.mxu0 %v420_v0  ;;  %1191 = vmatpush3.bf16.msra.mxu1 %v420_v0 }
 0x11f   : > { %1109 = vmatprep.subr.bf16.mxu0 %v421_v3  ;;  %1184 = vmatprep.subr.bf16.mxu1 %v421_v3 }
 0x122   : > { %1110 = vmatpush3.bf16.msra.mxu0 %v421_v3  ;;  %1192 = vmatpush3.bf16.msra.mxu1 %v421_v3 }
 0x123   : > { %1111 = vmatprep.subr.bf16.mxu0 %v422_v6  ;;  %1185 = vmatprep.subr.bf16.mxu1 %v422_v6 }
 0x126   : > { %1112 = vmatpush3.bf16.msra.mxu0 %v422_v6  ;;  %1193 = vmatpush3.bf16.msra.mxu1 %v422_v6 }
 0x127   : > { %1113 = vmatprep.subr.bf16.mxu0 %v423_v9  ;;  %1186 = vmatprep.subr.bf16.mxu1 %v423_v9 }
 0x12a   : > { %1114 = vmatpush3.bf16.msra.mxu0 %v423_v9  ;;  %1194 = vmatpush3.bf16.msra.mxu1 %v423_v9 }
 0x12d   : > { %1116 = vmatmul.mubr.bf16.vlgmr.msra.gmra.mrb[0].mxu0 %v397_v14  ;;  %1120 = vmatmul.mubr.bf16.vlgmr.msra.gmra.mrb[0].mxu1 %v399_v15 }
 0x200   : > { %v1117_v16 = vpop.f32.mrb[0].mxu0  ;;  %v1121_v17 = vpop.f32.mrb[0].mxu1 }
 0x201   : > { %491 = vst [vmem:[#allocation2 + $0x10] sm:$0xff] %v1117_v16  ;;  %495 = vst [vmem:[#allocation2 + $0x30] sm:$0xff] %v1121_v17  ;;  %v458_v18 = vpop.f32.mrb[1].mxu0  ;;  %v474_v19 = vpop.f32.mrb[1].mxu1 }
 0x202   : > { %489 = vst [vmem:[#allocation2] sm:$0xff] %v458_v18  ;;  %493 = vst [vmem:[#allocation2 + $0x20] sm:$0xff] %v474_v19  ;;  %v1118_v20 = vpop.f32.mrb[2].mxu0  ;;  %v1122_v21 = vpop.f32.mrb[2].mxu1 }
 0x203   : > { %492 = vst [vmem:[#allocation2 + $0x18] sm:$0xff] %v1118_v20  ;;  %496 = vst [vmem:[#allocation2 + $0x38] sm:$0xff] %v1122_v21  ;;  %v461_v22 = vpop.f32.mrb[3].mxu0  ;;  %v477_v23 = vpop.f32.mrb[3].mxu1 }
 0x204   : > { %490 = vst [vmem:[#allocation2 + $0x8] sm:$0xff] %v461_v22  ;;  %494 = vst [vmem:[#allocation2 + $0x28] sm:$0xff] %v477_v23 }
 0x205 PF: > { %v1497_v24 = vld [vmem:[%s1787_s0 + $0x10] sm:$0xff]   ;;  %vm513_vm0 = vcmask 523264   ;;  %v1502_v25 = vld [vmem:[%s1787_s0] sm:$0xff]   ;;  %v1511_v30 = vld [vmem:[%s1787_s0 + $0x8] sm:$0xff]   ;;  %p1003_p6 = scmp.ne.s32.totalorder %s1306_s21, 0 }
 0x206   : > { %v1022_v26 = vunpack.c.l.bf16 %v1497_v24  ;;  %v1014_v27 = vunpack.c.l.bf16 %v1502_v25  ;;  %v1023_v28 = vunpack.c.h.bf16 %v1497_v24  ;;  %v1015_v29 = vunpack.c.h.bf16 %v1502_v25  ;;  %v1530_v40 = vld [vmem:[%s1787_s0 + $0x18] sm:$0xff]  }
 0x207   : > { %v1019_v35 = vunpack.c.h.bf16 %v1511_v30  ;;  %v1018_v38 = vunpack.c.l.bf16 %v1511_v30  ;;  %v1027_v43 = vunpack.c.h.bf16 %v1530_v40  ;;  %v1026_v44 = vunpack.c.l.bf16 %v1530_v40 }
 0x208   : > { %v526_v33 = vsel %vm513_vm0, %v1022_v26, 0.0  ;;  %v514_v34 = vsel %vm513_vm0, %v1014_v27, 0.0  ;;  %v529_v36 = vsel %vm513_vm0, %v1023_v28, 0.0  ;;  %v517_v37 = vsel %vm513_vm0, %v1015_v29, 0.0  ;;  %v584_v47 = vld [vmem:[#allocation2 + $0x10] sm:$0xff] }
 0x209   : > { %v582_v31 = vld [vmem:[#allocation2] sm:$0xff]  ;;  %527 = vadd.xlane.f32.xlu1 %v526_v33  ;;  %515 = vadd.xlane.f32.xlu0 %v514_v34  ;;  %v523_v41 = vsel %vm513_vm0, %v1019_v35, 0.0  ;;  %v520_v42 = vsel %vm513_vm0, %v1018_v38, 0.0  ;;  %v535_v45 = vsel %vm513_vm0, %v1027_v43, 0.0  ;;  %v532_v46 = vsel %vm513_vm0, %v1026_v44, 0.0  ;;  %v588_v53 = vld [vmem:[#allocation2 + $0x30] sm:$0xff] }
 0x20a   : > { %v585_v48 = vld [vmem:[#allocation2 + $0x18] sm:$0xff]  ;;  %v586_v50 = vld [vmem:[#allocation2 + $0x20] sm:$0xff] }
 0x20b   : > { %v583_v32 = vld [vmem:[#allocation2 + $0x8] sm:$0xff]  ;;  %v591_v49 = vpack.c.bf16 %v585_v48, %v584_v47  ;;  %v589_v54 = vld [vmem:[#allocation2 + $0x38] sm:$0xff] }
 0x20c   : > { %v590_v39 = vpack.c.bf16 %v583_v32, %v582_v31  ;;  %v587_v51 = vld [vmem:[#allocation2 + $0x28] sm:$0xff]  ;;  %v593_v55 = vpack.c.bf16 %v589_v54, %v588_v53 }
 0x20d   : > { %530 = vadd.xlane.f32.xlu1 %v529_v36  ;;  %518 = vadd.xlane.f32.xlu0 %v517_v37  ;;  %v592_v52 = vpack.c.bf16 %v587_v51, %v586_v50 }
 0x20e   : > { %1123 = vmatprep.subr.bf16.mxu0 %v590_v39  ;;  %1195 = vmatprep.subr.bf16.mxu1 %v590_v39 }
 0x20f   : > { %1124 = vmatpush3.bf16.msra.mxu0 %v590_v39  ;;  %1199 = vmatpush3.bf16.msra.mxu1 %v590_v39 }
 0x210   : > { %1125 = vmatprep.subr.bf16.mxu0 %v591_v49  ;;  %1196 = vmatprep.subr.bf16.mxu1 %v591_v49 }
 0x211   : > { %524 = vadd.xlane.f32.xlu1 %v523_v41  ;;  %521 = vadd.xlane.f32.xlu0 %v520_v42 }
 0x213   : > { %1126 = vmatpush3.bf16.msra.mxu0 %v591_v49  ;;  %1200 = vmatpush3.bf16.msra.mxu1 %v591_v49 }
 0x214   : > { %1127 = vmatprep.subr.bf16.mxu0 %v592_v52  ;;  %1197 = vmatprep.subr.bf16.mxu1 %v592_v52 }
 0x215   : > { %536 = vadd.xlane.f32.xlu1 %v535_v45  ;;  %533 = vadd.xlane.f32.xlu0 %v532_v46 }
 0x217   : > { %1128 = vmatpush3.bf16.msra.mxu0 %v592_v52  ;;  %1201 = vmatpush3.bf16.msra.mxu1 %v592_v52 }
 0x218   : > { %1129 = vmatprep.subr.bf16.mxu0 %v593_v55  ;;  %1198 = vmatprep.subr.bf16.mxu1 %v593_v55 }
 0x21b   : > { %1130 = vmatpush3.bf16.msra.mxu0 %v593_v55  ;;  %1202 = vmatpush3.bf16.msra.mxu1 %v593_v55 }
 0x296   : > { %v528_v56 = vpop.xlane.xlu1 %527  ;;  %v516_v57 = vpop.xlane.xlu0 %515 }
 0x297   : > { %vm542_vm1 = vcmp.gt.f32.partialorder %v528_v56, 0.0  ;;  %vm538_vm2 = vcmp.gt.f32.partialorder %v516_v57, 0.0 }
 0x298   : > { %v578_v58 = vsel %vm542_vm1, %v528_v56, 64.0  ;;  %v574_v59 = vsel %vm538_vm2, %v516_v57, 64.0  ;;  %v562_v62 = vsel %vm538_vm2, %v1014_v27, 1.0  ;;  %v566_v63 = vsel %vm542_vm1, %v1022_v26, 1.0 }
 0x29a   : > { %v531_v60 = vpop.xlane.xlu1 %530  ;;  %v519_v61 = vpop.xlane.xlu0 %518 }
 0x29b   : > { %vm543_vm3 = vcmp.gt.f32.partialorder %v531_v60, 0.0  ;;  %vm539_vm4 = vcmp.gt.f32.partialorder %v519_v61, 0.0 }
 0x29c   : > { %v579_v0 = vsel %vm543_vm3, %v531_v60, 64.0  ;;  %v575_v1 = vsel %vm539_vm4, %v519_v61, 64.0  ;;  %v563_v2 = vsel %vm539_vm4, %v1015_v29, 1.0  ;;  %v567_v3 = vsel %vm543_vm3, %v1023_v28, 1.0 }
 0x29d   : > { %v570_v4 = vpack.c.bf16 %v563_v2, %v562_v62  ;;  %v572_v5 = vpack.c.bf16 %v567_v3, %v566_v63 }
 0x29e   : > { %v525_v6 = vpop.xlane.xlu1 %524  ;;  %v522_v7 = vpop.xlane.xlu0 %521 }
 0x29f   : > { %vm541_vm5 = vcmp.gt.f32.partialorder %v525_v6, 0.0  ;;  %vm540_vm6 = vcmp.gt.f32.partialorder %v522_v7, 0.0  ;;  %1131 = vmatprep.mubr.msk.bf16.mxu0 %vm513_vm0, %v570_v4  ;;  %1135 = vmatprep.mubr.msk.bf16.mxu1 %vm513_vm0, %v572_v5 }
 0x2a0   : > { %v565_v8 = vsel %vm541_vm5, %v1019_v35, 1.0  ;;  %v577_v9 = vsel %vm541_vm5, %v525_v6, 64.0  ;;  %v564_v10 = vsel %vm540_vm6, %v1018_v38, 1.0  ;;  %v576_v11 = vsel %vm540_vm6, %v522_v7, 64.0 }
 0x2a1   : > { %v571_v12 = vpack.c.bf16 %v565_v8, %v564_v10  ;;  %1244 = vrcp.f32 %v576_v11 }
 0x2a2   : > { %v537_v13 = vpop.xlane.xlu1 %536  ;;  %v534_v14 = vpop.xlane.xlu0 %533  ;;  %1246 = vrcp.f32 %v574_v59 }
 0x2a3   : > { %vm545_vm7 = vcmp.gt.f32.partialorder %v537_v13, 0.0  ;;  %vm544_vm8 = vcmp.gt.f32.partialorder %v534_v14, 0.0  ;;  %1132 = vmatmul.mubr.msk.bf16.vlgmr.msra.gmra.mrb[0].mxu0 %vm513_vm0, %v571_v12  ;;  %1248 = vrcp.f32 %v577_v9 }
 0x2a4   : > { %v569_v15 = vsel %vm545_vm7, %v1027_v43, 1.0  ;;  %v581_v16 = vsel %vm545_vm7, %v537_v13, 64.0  ;;  %v568_v17 = vsel %vm544_vm8, %v1026_v44, 1.0  ;;  %v580_v18 = vsel %vm544_vm8, %v534_v14, 64.0 }
 0x2a5   : > { %v573_v19 = vpack.c.bf16 %v569_v15, %v568_v17  ;;  %1250 = vrcp.f32 %v575_v1  ;;  %v1316_v44 = vmov (!%p1003_p6), 0.0  }
 0x2a6   : > { %1252 = vrcp.f32 %v580_v18  ;;  %700 = vst [vmem:[%s1793_s6] sm:$0xff] (!%p1003_p6), %v1316_v44  ;;  %701 = vst [vmem:[%s1793_s6 + $0x8] sm:$0xff] (!%p1003_p6), %v1316_v44 }
 0x2a7   : > { %1136 = vmatmul.mubr.msk.bf16.vlgmr.msra.gmra.mrb[0].mxu1 %vm513_vm0, %v573_v19  ;;  %1254 = vrcp.f32 %v578_v58  ;;  %702 = vst [vmem:[%s1793_s6 + $0x10] sm:$0xff] (!%p1003_p6), %v1316_v44  ;;  %703 = vst [vmem:[%s1793_s6 + $0x18] sm:$0xff] (!%p1003_p6), %v1316_v44 }
 0x2a8   : > { %1256 = vrcp.f32 %v581_v16  ;;  %704 = vst [vmem:[%s1793_s6 + $0x20] sm:$0xff] (!%p1003_p6), %v1316_v44  ;;  %705 = vst [vmem:[%s1793_s6 + $0x28] sm:$0xff] (!%p1003_p6), %v1316_v44 }
 0x2a9   : > { %1258 = vrcp.f32 %v579_v0  ;;  %706 = vst [vmem:[%s1793_s6 + $0x30] sm:$0xff] (!%p1003_p6), %v1316_v44  ;;  %707 = vst [vmem:[%s1793_s6 + $0x38] sm:$0xff] (!%p1003_p6), %v1316_v44 }
 0x2ab   : > { %v1245_v20 = vpop.eup %1244 }
 0x2ac   : > { %v1247_v22 = vpop.eup %1246 }
 0x2ad   : > { %v1249_v25 = vpop.eup %1248 }
 0x2af   : > { %v1251_v28 = vpop.eup %1250 }
 0x2b0   : > { %v1253_v31 = vpop.eup %1252 }
 0x2b1   : > { %v1255_v34 = vpop.eup %1254 }
 0x2b2   : > { %v1257_v37 = vpop.eup %1256 }
 0x2b3   : > { %v1259_v40 = vpop.eup %1258 }
 0x376   : > { %v1133_v21 = vpop.f32.mrb[0].mxu0 }
 0x377   : > { %v1566_v23 = vmul.f32 %v1245_v20, %v1133_v21  ;;  %v640_v24 = vpop.f32.mrb[1].mxu0 }
 0x378   : > { %v679_v26 = vmul.f32 %v1247_v22, %v640_v24  ;;  %v1134_v27 = vpop.f32.mrb[2].mxu0  ;;  %689 = sbr.rel (%p1003_p6) target bundleno = 897 (0x381), region = 56 }
 0x379   : > { %v1568_v29 = vmul.f32 %v1249_v25, %v1134_v27  ;;  %v643_v30 = vpop.f32.mrb[3].mxu0  ;;  %694 = vst [vmem:[#allocation3 + $0x10] sm:$0xff] (!%p1003_p6), %v1566_v23 }
 0x37a   : > { %v680_v32 = vmul.f32 %v1251_v28, %v643_v30  ;;  %v1137_v33 = vpop.f32.mrb[0].mxu1  ;;  %692 = vst [vmem:[#allocation3] sm:$0xff] (!%p1003_p6), %v679_v26 }
 0x37b   : > { %v1570_v35 = vmul.f32 %v1253_v31, %v1137_v33  ;;  %v656_v36 = vpop.f32.mrb[1].mxu1  ;;  %695 = vst [vmem:[#allocation3 + $0x18] sm:$0xff] (!%p1003_p6), %v1568_v29 }
 0x37c   : > { %v683_v38 = vmul.f32 %v1255_v34, %v656_v36  ;;  %v1138_v39 = vpop.f32.mrb[2].mxu1  ;;  %693 = vst [vmem:[#allocation3 + $0x8] sm:$0xff] (!%p1003_p6), %v680_v32 }
 0x37d   : > { %v1572_v41 = vmul.f32 %v1257_v37, %v1138_v39  ;;  %v659_v42 = vpop.f32.mrb[3].mxu1  ;;  %698 = vst [vmem:[#allocation3 + $0x30] sm:$0xff] (!%p1003_p6), %v1570_v35 }
 0x37e   : > { %v684_v43 = vmul.f32 %v1259_v40, %v659_v42  ;;  %696 = vst [vmem:[#allocation3 + $0x20] sm:$0xff] (!%p1003_p6), %v683_v38 }
 0x37f   : > { %699 = vst [vmem:[#allocation3 + $0x38] sm:$0xff] %v1572_v41 }
 0x380   : > { %697 = vst [vmem:[#allocation3 + $0x28] sm:$0xff] %v684_v43 }
 0x381 PF: > { %p1004_p7 = scmp.ne.s32.totalorder %s1306_s21, 1 }
 0x382   : > { %v715_v45 = vld [vmem:[%s1791_s4] sm:$0xff] (!%p1004_p7)  ;;  %v716_v46 = vld [vmem:[%s1791_s4 + $0x8] sm:$0xff] (!%p1004_p7)  ;;  %v717_v47 = vld [vmem:[%s1791_s4 + $0x10] sm:$0xff] (!%p1004_p7)  ;;  %v711_v48 = vpack.c.bf16 (!%p1004_p7), %v680_v32, %v679_v26  ;;  %v713_v49 = vpack.c.bf16 (!%p1004_p7), %v684_v43, %v683_v38  ;;  %v712_v7 = vpack.c.bf16 (!%p1004_p7), %v1568_v29, %v1566_v23  ;;  %v714_v8 = vpack.c.bf16 (!%p1004_p7), %v1572_v41, %v1570_v35 }
 0x383   : > { %710 = sbr.rel (%p1004_p7) target bundleno = 1483 (0x5cb), region = 60  ;;  %v731_v50 = vpack.c.bf16 (!%p1004_p7), %v716_v46, %v715_v45  ;;  %v718_v51 = vld [vmem:[%s1791_s4 + $0x18] sm:$0xff] (!%p1004_p7)  ;;  %v719_v53 = vld [vmem:[%s1791_s4 + $0x20] sm:$0xff] (!%p1004_p7)  ;;  %v720_v54 = vld [vmem:[%s1791_s4 + $0x28] sm:$0xff] (!%p1004_p7)  ;;  %v811_v9 = vlaneseq (!%p1004_p7) }
 0x384   : > { %v732_v52 = vpack.c.bf16 (!%p1004_p7), %v718_v51, %v717_v47  ;;  %1155 = vmatprep.mubr.bf16.mxu0 (!%p1004_p7), %v711_v48  ;;  %1159 = vmatprep.mubr.bf16.mxu1 (!%p1004_p7), %v713_v49  ;;  %v733_v55 = vpack.c.bf16 (!%p1004_p7), %v720_v54, %v719_v53  ;;  %v721_v56 = vld [vmem:[%s1791_s4 + $0x30] sm:$0xff] (!%p1004_p7)  ;;  %v722_v57 = vld [vmem:[%s1791_s4 + $0x38] sm:$0xff] (!%p1004_p7)  ;;  %v723_v59 = vld [vmem:[%s1791_s4 + $0x40] sm:$0xff] (!%p1004_p7) }
 0x385   : > { %1139 = vmatprep.subr.bf16.mxu0 (!%p1004_p7), %v731_v50  ;;  %1203 = vmatprep.subr.bf16.mxu1 (!%p1004_p7), %v731_v50  ;;  %v734_v58 = vpack.c.bf16 (!%p1004_p7), %v722_v57, %v721_v56  ;;  %v724_v60 = vld [vmem:[%s1791_s4 + $0x48] sm:$0xff] (!%p1004_p7)  ;;  %v725_v62 = vld [vmem:[%s1791_s4 + $0x50] sm:$0xff] (!%p1004_p7)  ;;  %v726_v63 = vld [vmem:[%s1791_s4 + $0x58] sm:$0xff] (!%p1004_p7)  ;;  %v1656_v10 = vand.u32 (!%p1004_p7), 127, %v811_v9 }
 0x386   : > { %1140 = vmatpush3.bf16.msra.mxu0 (!%p1004_p7), %v731_v50  ;;  %1211 = vmatpush3.bf16.msra.mxu1 (!%p1004_p7), %v731_v50  ;;  %v735_v61 = vpack.c.bf16 (!%p1004_p7), %v724_v60, %v723_v59  ;;  %v736_v0 = vpack.c.bf16 (!%p1004_p7), %v726_v63, %v725_v62  ;;  %v727_v1 = vld [vmem:[%s1791_s4 + $0x60] sm:$0xff] (!%p1004_p7)  ;;  %v728_v2 = vld [vmem:[%s1791_s4 + $0x68] sm:$0xff] (!%p1004_p7)  ;;  %v729_v4 = vld [vmem:[%s1791_s4 + $0x70] sm:$0xff] (!%p1004_p7) }
 0x387   : > { %1141 = vmatprep.subr.bf16.mxu0 (!%p1004_p7), %v732_v52  ;;  %1204 = vmatprep.subr.bf16.mxu1 (!%p1004_p7), %v732_v52  ;;  %v737_v3 = vpack.c.bf16 (!%p1004_p7), %v728_v2, %v727_v1  ;;  %v730_v5 = vld [vmem:[%s1791_s4 + $0x78] sm:$0xff] (!%p1004_p7)  ;;  %v1005_v11 = vld [vmem:[%s1792_s5] ss:$0 sm:$0xff] (!%p1004_p7)  ;;  %vm813_vm9 = vcmp.lt.s32.totalorder (!%p1004_p7), %v1656_v10, 16 }
 0x388   : > { %v738_v6 = vpack.c.bf16 (!%p1004_p7), %v730_v5, %v729_v4 }
 0x38a   : > { %1142 = vmatpush3.bf16.msra.mxu0 %v732_v52  ;;  %1212 = vmatpush3.bf16.msra.mxu1 %v732_v52 }
 0x38b   : > { %1143 = vmatprep.subr.bf16.mxu0 %v733_v55  ;;  %1205 = vmatprep.subr.bf16.mxu1 %v733_v55 }
 0x38e   : > { %1144 = vmatpush3.bf16.msra.mxu0 %v733_v55  ;;  %1213 = vmatpush3.bf16.msra.mxu1 %v733_v55 }
 0x38f   : > { %1145 = vmatprep.subr.bf16.mxu0 %v734_v58  ;;  %1206 = vmatprep.subr.bf16.mxu1 %v734_v58 }
 0x392   : > { %1146 = vmatpush3.bf16.msra.mxu0 %v734_v58  ;;  %1214 = vmatpush3.bf16.msra.mxu1 %v734_v58 }
 0x393   : > { %1147 = vmatprep.subr.bf16.mxu0 %v735_v61  ;;  %1207 = vmatprep.subr.bf16.mxu1 %v735_v61 }
 0x396   : > { %1148 = vmatpush3.bf16.msra.mxu0 %v735_v61  ;;  %1215 = vmatpush3.bf16.msra.mxu1 %v735_v61 }
 0x397   : > { %1149 = vmatprep.subr.bf16.mxu0 %v736_v0  ;;  %1208 = vmatprep.subr.bf16.mxu1 %v736_v0 }
 0x39a   : > { %1150 = vmatpush3.bf16.msra.mxu0 %v736_v0  ;;  %1216 = vmatpush3.bf16.msra.mxu1 %v736_v0 }
 0x39b   : > { %1151 = vmatprep.subr.bf16.mxu0 %v737_v3  ;;  %1209 = vmatprep.subr.bf16.mxu1 %v737_v3 }
 0x39e   : > { %1152 = vmatpush3.bf16.msra.mxu0 %v737_v3  ;;  %1217 = vmatpush3.bf16.msra.mxu1 %v737_v3 }
 0x39f   : > { %1153 = vmatprep.subr.bf16.mxu0 %v738_v6  ;;  %1210 = vmatprep.subr.bf16.mxu1 %v738_v6 }
 0x3a2   : > { %1154 = vmatpush3.bf16.msra.mxu0 %v738_v6  ;;  %1218 = vmatpush3.bf16.msra.mxu1 %v738_v6 }
 0x3a5   : > { %1156 = vmatmul.mubr.bf16.vlgmr.msra.gmra.mrb[0].mxu0 %v712_v7  ;;  %1160 = vmatmul.mubr.bf16.vlgmr.msra.gmra.mrb[0].mxu1 %v714_v8 }
 0x478   : > { %v1157_v12 = vpop.f32.mrb[0].mxu0  ;;  %v1161_v13 = vpop.f32.mrb[0].mxu1 }
 0x479   : > { %v1662_v14 = vadd.f32 %v1157_v12, %v1005_v11  ;;  %v780_v15 = vpop.f32.mrb[1].mxu0  ;;  %v796_v16 = vpop.f32.mrb[1].mxu1  ;;  %v1691_v32 = vadd.f32 %v1161_v13, %v1005_v11 }
 0x47a   : > { %v1664_v17 = vadd.f32 %v1005_v11, %v780_v15  ;;  %v1158_v18 = vpop.f32.mrb[2].mxu0  ;;  %v1666_v19 = vadd.f32 %v1005_v11, %v796_v16  ;;  %v1162_v20 = vpop.f32.mrb[2].mxu1 }
 0x47b   : > { %v1668_v21 = vadd.f32 %v1158_v18, %v1005_v11  ;;  %v783_v22 = vpop.f32.mrb[3].mxu0  ;;  %v799_v23 = vpop.f32.mrb[3].mxu1  ;;  %v816_v24 = vsel %vm813_vm9, %v1662_v14, -1e+30  ;;  %v1686_v30 = vadd.f32 %v1162_v20, %v1005_v11  ;;  %v820_v35 = vsel %vm813_vm9, %v1691_v32, -1e+30 }
 0x47c   : > { %826 = vmax.xlane.f32.xlu1 %v816_v24  ;;  %v814_v25 = vsel %vm813_vm9, %v1664_v17, -1e+30  ;;  %v818_v26 = vsel %vm813_vm9, %v1666_v19, -1e+30  ;;  %v1679_v27 = vadd.f32 %v1005_v11, %v799_v23  ;;  %v1684_v29 = vadd.f32 %v1005_v11, %v783_v22 }
 0x47d   : > { %822 = vmax.xlane.f32.xlu0 %v814_v25  ;;  %v817_v28 = vsel %vm813_vm9, %v1668_v21, -1e+30  ;;  %v821_v34 = vsel %vm813_vm9, %v1686_v30, -1e+30 }
 0x47e   : > { %v819_v31 = vsel %vm813_vm9, %v1679_v27, -1e+30  ;;  %v815_v33 = vsel %vm813_vm9, %v1684_v29, -1e+30 }
 0x480   : > { %828 = vmax.xlane.f32.xlu1 %v817_v28 }
 0x481   : > { %830 = vmax.xlane.f32.xlu0 %v818_v26 }
 0x484   : > { %832 = vmax.xlane.f32.xlu1 %v819_v31 }
 0x485   : > { %824 = vmax.xlane.f32.xlu0 %v815_v33 }
 0x488   : > { %836 = vmax.xlane.f32.xlu1 %v821_v34 }
 0x489   : > { %834 = vmax.xlane.f32.xlu0 %v820_v35 }
 0x509   : > { %v827_v36 = vpop.xlane.xlu1 %826 }
 0x50a   : > { %v840_v37 = vsub.f32 %v816_v24, %v827_v36  ;;  %v1702_v38 = vpop.xlane.xlu0 %822 }
 0x50b   : > { %v838_v39 = vsub.f32 %v814_v25, %v1702_v38 }
 0x50c   : > { %v850_v40 = vmul.f32 1.442695, %v840_v37 }
 0x50d   : > { %v846_v41 = vmul.f32 1.442695, %v838_v39  ;;  %v1705_v42 = vpop.xlane.xlu1 %828 }
 0x50e   : > { %1260 = vpow2.f32 %v850_v40  ;;  %v841_v43 = vsub.f32 %v817_v28, %v1705_v42  ;;  %v1708_v44 = vpop.xlane.xlu0 %830 }
 0x50f   : > { %v842_v45 = vsub.f32 %v818_v26, %v1708_v44  ;;  %1262 = vpow2.f32 %v846_v41 }
 0x510   : > { %v852_v46 = vmul.f32 1.442695, %v841_v43 }
 0x511   : > { %v1711_v47 = vpop.xlane.xlu1 %832  ;;  %v854_v48 = vmul.f32 1.442695, %v842_v45 }
 0x512   : > { %1264 = vpow2.f32 %v852_v46  ;;  %v843_v49 = vsub.f32 %v819_v31, %v1711_v47  ;;  %v1714_v50 = vpop.xlane.xlu0 %824 }
 0x513   : > { %v839_v51 = vsub.f32 %v815_v33, %v1714_v50  ;;  %1266 = vpow2.f32 %v854_v48 }
 0x514   : > { %v856_v54 = vmul.f32 1.442695, %v843_v49 }
 0x515   : > { %v848_v52 = vmul.f32 1.442695, %v839_v51  ;;  %v1717_v53 = vpop.xlane.xlu1 %836 }
 0x516   : > { %v1719_v55 = vpop.xlane.xlu0 %834  ;;  %v845_v56 = vsub.f32 %v821_v34, %v1717_v53 }
 0x517   : > { %1268 = vpow2.f32 %v848_v52  ;;  %v844_v57 = vsub.f32 %v820_v35, %v1719_v55 }
 0x518   : > { %v1261_v58 = vpop.eup %1260  ;;  %1270 = vpow2.f32 %v856_v54  ;;  %v860_v61 = vmul.f32 1.442695, %v845_v56 }
 0x519   : > { %v858_v59 = vmul.f32 1.442695, %v844_v57  ;;  %866 = vadd.xlane.f32.xlu0 %v1261_v58  ;;  %v1263_v60 = vpop.eup %1262 }
 0x51b   : > { %1272 = vpow2.f32 %v858_v59 }
 0x51c   : > { %v1265_v62 = vpop.eup %1264  ;;  %1274 = vpow2.f32 %v860_v61 }
 0x51d   : > { %868 = vadd.xlane.f32.xlu1 %v1265_v62  ;;  %862 = vadd.xlane.f32.xlu0 %v1263_v60  ;;  %v1267_v63 = vpop.eup %1266 }
 0x521   : > { %v1269_v0 = vpop.eup %1268  ;;  %870 = vadd.xlane.f32.xlu0 %v1267_v63 }
 0x522   : > { %864 = vadd.xlane.f32.xlu1 %v1269_v0  ;;  %v1271_v1 = vpop.eup %1270 }
 0x525   : > { %v1273_v2 = vpop.eup %1272 }
 0x526   : > { %872 = vadd.xlane.f32.xlu1 %v1271_v1  ;;  %874 = vadd.xlane.f32.xlu0 %v1273_v2  ;;  %v1275_v3 = vpop.eup %1274 }
 0x52a   : > { %876 = vadd.xlane.f32.xlu1 %v1275_v3 }
 0x5a6   : > { %v867_v4 = vpop.xlane.xlu0 %866 }
 0x5a7   : > { %1276 = vlog2.f32 %v867_v4 }
 0x5aa   : > { %v869_v5 = vpop.xlane.xlu1 %868  ;;  %v863_v6 = vpop.xlane.xlu0 %862 }
 0x5ab   : > { %1278 = vlog2.f32 %v869_v5 }
 0x5ac   : > { %1280 = vlog2.f32 %v863_v6 }
 0x5ae   : > { %v871_v7 = vpop.xlane.xlu0 %870 }
 0x5af   : > { %1282 = vlog2.f32 %v871_v7  ;;  %v865_v8 = vpop.xlane.xlu1 %864 }
 0x5b0   : > { %1284 = vlog2.f32 %v865_v8 }
 0x5b1   : > { %v1277_v9 = vpop.eup %1276 }
 0x5b2   : > { %v883_v11 = vmul.f32 0.6931472, %v1277_v9 }
 0x5b3   : > { %v873_v12 = vpop.xlane.xlu1 %872  ;;  %v875_v13 = vpop.xlane.xlu0 %874 }
 0x5b4   : > { %v896_v15 = vadd.f32 %v883_v11, %v827_v36  ;;  %1286 = vlog2.f32 %v873_v12 }
 0x5b5   : > { %v1279_v16 = vpop.eup %1278  ;;  %1288 = vlog2.f32 %v875_v13 }
 0x5b6   : > { %v1281_v18 = vpop.eup %1280  ;;  %v904_v20 = vsub.f32 %v1662_v14, %v896_v15  ;;  %v885_v22 = vmul.f32 0.6931472, %v1279_v16 }
 0x5b7   : > { %v879_v23 = vmul.f32 0.6931472, %v1281_v18  ;;  %v877_v24 = vpop.xlane.xlu1 %876 }
 0x5b8   : > { %v912_v25 = vsel %vm813_vm9, %v904_v20, 0.0  ;;  %v897_v26 = vadd.f32 %v885_v22, %v1705_v42  ;;  %1290 = vlog2.f32 %v877_v24 }
 0x5b9   : > { %v1283_v28 = vpop.eup %1282  ;;  %920 = vst [vmem:[%s1793_s6 + $0x10] sm:$0xff] %v912_v25  ;;  %v894_v31 = vadd.f32 %v879_v23, %v1702_v38 }
 0x5ba   : > { %v1285_v33 = vpop.eup %1284  ;;  %v905_v34 = vsub.f32 %v1668_v21, %v897_v26  ;;  %v887_v14 = vmul.f32 0.6931472, %v1283_v28 }
 0x5bb   : > { %v902_v35 = vsub.f32 %v1664_v17, %v894_v31  ;;  %v881_v36 = vmul.f32 0.6931472, %v1285_v33 }
 0x5bc   : > { %v913_v37 = vsel %vm813_vm9, %v905_v34, 0.0  ;;  %v898_v39 = vadd.f32 %v887_v14, %v1708_v44 }
 0x5bd   : > { %921 = vst [vmem:[%s1793_s6 + $0x18] sm:$0xff] %v913_v37  ;;  %v910_v40 = vsel %vm813_vm9, %v902_v35, 0.0  ;;  %v895_v38 = vadd.f32 %v881_v36, %v1714_v50 }
 0x5be   : > { %v1287_v41 = vpop.eup %1286  ;;  %918 = vst [vmem:[%s1793_s6] sm:$0xff] %v910_v40  ;;  %v906_v17 = vsub.f32 %v1666_v19, %v898_v39 }
 0x5bf   : > { %v1289_v21 = vpop.eup %1288  ;;  %v903_v42 = vsub.f32 %v1684_v29, %v895_v38  ;;  %v889_v43 = vmul.f32 0.6931472, %v1287_v41 }
 0x5c0   : > { %v914_v44 = vsel %vm813_vm9, %v906_v17, 0.0  ;;  %v891_v45 = vmul.f32 0.6931472, %v1289_v21 }
 0x5c1   : > { %922 = vst [vmem:[%s1793_s6 + $0x20] sm:$0xff] %v914_v44  ;;  %v911_v46 = vsel %vm813_vm9, %v903_v42, 0.0  ;;  %v899_v48 = vadd.f32 %v889_v43, %v1711_v47 }
 0x5c2   : > { %v1291_v49 = vpop.eup %1290  ;;  %919 = vst [vmem:[%s1793_s6 + $0x8] sm:$0xff] %v911_v46  ;;  %v900_v19 = vadd.f32 %v891_v45, %v1719_v55 }
 0x5c3   : > { %v907_v29 = vsub.f32 %v1679_v27, %v899_v48  ;;  %v893_v50 = vmul.f32 0.6931472, %v1291_v49 }
 0x5c4   : > { %v908_v51 = vsub.f32 %v1691_v32, %v900_v19 }
 0x5c5   : > { %v915_v52 = vsel %vm813_vm9, %v907_v29, 0.0  ;;  %v901_v54 = vadd.f32 %v893_v50, %v1717_v53 }
 0x5c6   : > { %923 = vst [vmem:[%s1793_s6 + $0x28] sm:$0xff] %v915_v52  ;;  %v916_v47 = vsel %vm813_vm9, %v908_v51, 0.0 }
 0x5c7   : > { %924 = vst [vmem:[%s1793_s6 + $0x30] sm:$0xff] %v916_v47  ;;  %v909_v27 = vsub.f32 %v1686_v30, %v901_v54 }
 0x5c9   : > { %v917_v32 = vsel %vm813_vm9, %v909_v27, 0.0 }
 0x5ca   : > { %925 = vst [vmem:[%s1793_s6 + $0x38] sm:$0xff] %v917_v32 }
 0x5cb PF: > { %s16_s23 = sadd.s32 1, %s1314_s23   ;;  %s1794_s21 = smov %s1310_s22 }
 0x5cc   : > { %p13_p8 = scmp.ge.s32.totalorder %s16_s23, 4   ;;  %s1795_s22 = smov %s1797_s24 }
 0x5ce   :  { %15 = sbr.rel (!%p13_p8) target bundleno = 2 (0x2), region = 91 }

</bundles_post_ra>
